<compile_context>
chip_gen: v5e
topology: v5e:2x2
jax: 0.10.0
libtpu: 0.0.40
codegen_flags: <defaults>
</compile_context>

<pallas_src>
import functools

import jax
import jax.numpy as jnp
from jax.experimental import pallas as pl
from jax.experimental.pallas import tpu as pltpu


def _round_up(x, m):
    return -(-x // m) * m


def _grad_loss_kernel(p_ref, t_ref, sums_ref, *, H, W):
    i = pl.program_id(0)

    @pl.when(i == 0)
    def _():
        sums_ref[0] = jnp.float32(0.0)
        sums_ref[1] = jnp.float32(0.0)

    # grad(pred) - grad(target) == grad(pred - target)
    d = p_ref[...].astype(jnp.float32) - t_ref[...].astype(jnp.float32)  # (TR, S)
    S = H * W

    # Neighbour at +W lanes (next image row) / +1 lane (next image col) via a
    # circular lane rotate; wrap-around positions are masked off below.
    # jnp.roll semantics: out[:, j] = d[:, (j - shift) % S], so shift = S - W
    # gives out[:, j] = d[:, (j + W) % S].
    d_xn = pltpu.roll(d, shift=S - W, axis=1)  # next image row
    d_yn = pltpu.roll(d, shift=S - 1, axis=1)  # next image col

    # Masks depend only on the lane index -> build them at (1, S) and let the
    # select broadcast, instead of full (TR, S) iota/mod/compare work.
    lane = jax.lax.broadcasted_iota(jnp.int32, (1, S), 1)
    mask_x = lane < (S - W)            # image row index < H - 1
    mask_y = (lane % W) < (W - 1)      # image col index < W - 1

    gx = jnp.where(mask_x, jnp.abs(d_xn - d), 0.0)
    gy = jnp.where(mask_y, jnp.abs(d_yn - d), 0.0)

    # Cross-lane/sublane reductions go to the XLU; the scalar accumulate lives
    # in SMEM and persists across grid steps (output has no blocked axis).
    sums_ref[0] += jnp.sum(gx)
    sums_ref[1] += jnp.sum(gy)


def gradient_loss(predict, target):
    """Pallas TPU implementation of GradientLoss.forward(predict, target)."""
    assert predict.shape == target.shape
    N, C, H, W = predict.shape
    NC = N * C
    S = H * W

    # Each image plane becomes one lane-dense row.
    p = predict.reshape(NC, S)
    t = target.reshape(NC, S)

    # Planes per grid step: target ~4 MiB input blocks, multiple of 8 rows
    # (sublane tiling), never more than the (row-padded) plane count.
    itemsize = predict.dtype.itemsize
    target_block_bytes = 4 * 1024 * 1024
    tr = max(1, target_block_bytes // (S * itemsize))
    tr = min(_round_up(tr, 8), _round_up(NC, 8))

    nblk = -(-NC // tr)
    rows_total = nblk * tr
    if rows_total != NC:
        pad = rows_total - NC
        # Zero planes have zero gradients -> contribute nothing to the sums.
        p = jnp.pad(p, ((0, pad), (0, 0)))
        t = jnp.pad(t, ((0, pad), (0, 0)))

    kernel = functools.partial(_grad_loss_kernel, H=H, W=W)

    sums = pl.pallas_call(
        kernel,
        out_shape=jax.ShapeDtypeStruct((2,), jnp.float32),
        grid_spec=pltpu.PrefetchScalarGridSpec(
            num_scalar_prefetch=0,
            grid=(nblk,),
            in_specs=[
                pl.BlockSpec((tr, S), lambda i: (i, 0)),
                pl.BlockSpec((tr, S), lambda i: (i, 0)),
            ],
            out_specs=pl.BlockSpec(memory_space=pltpu.MemorySpace.SMEM),
        ),
        compiler_params=pltpu.CompilerParams(
            dimension_semantics=("arbitrary",),
            vmem_limit_bytes=64 * 1024 * 1024,
        ),
    )(p, t)

    # nn.L1Loss() uses mean reduction over each gradient tensor.
    n_gx = NC * (H - 1) * W
    n_gy = NC * H * (W - 1)
    return sums[0] / n_gx + sums[1] / n_gy


def _reference(predict, target):
    def compute_grad(img):
        gradx = img[..., 1:, :] - img[..., :-1, :]
        grady = img[..., 1:] - img[..., :-1]
        return gradx, grady

    pgx, pgy = compute_grad(predict)
    tgx, tgy = compute_grad(target)
    return jnp.mean(jnp.abs(pgx - tgx)) + jnp.mean(jnp.abs(pgy - tgy))


if __name__ == "__main__":
    key = jax.random.PRNGKey(0)
    k1, k2 = jax.random.split(key)
    N, C, H, W = 2, 4, 16, 16
    predict = jax.random.normal(k1, (N, C, H, W), dtype=jnp.float32)
    target = jax.random.normal(k2, (N, C, H, W), dtype=jnp.float32)

    out = gradient_loss(predict, target)
    out = jax.block_until_ready(out)

    ref = _reference(predict, target)
    assert jnp.allclose(out, ref, rtol=1e-5, atol=1e-5), (out, ref)

    print("KERNEL_OK")
</pallas_src>

<mosaic_0001>
module attributes {stable_mosaic.version = 11 : i64} {
  func.func @_grad_loss_kernel(%arg0: i32, %arg1: memref<8x256xf32, #tpu.memory_space<vmem>>, %arg2: memref<8x256xf32, #tpu.memory_space<vmem>>, %arg3: memref<2xf32, #tpu.memory_space<smem>>) attributes {dimension_semantics = [#tpu.dimension_semantics<arbitrary>], iteration_bounds = array<i64: 1>, scalar_prefetch = 0 : i64, scratch_operands = 0 : i64, tpu.core_type = #tpu.core_type<tc>, window_params = [{transform_indices = @transform_0, window_bounds = array<i64: 8, 256>}, {transform_indices = @transform_1, window_bounds = array<i64: 8, 256>}, {transform_indices = @transform_2, window_bounds = array<i64: 2>}]} {
    %c0_i32 = arith.constant 0 : i32
    %0 = arith.cmpi eq, %arg0, %c0_i32 : i32
    %1 = arith.extui %0 : i1 to i32
    %c0_i32_0 = arith.constant 0 : i32
    %2 = arith.cmpi ne, %1, %c0_i32_0 : i32
    scf.if %2 {
      %cst_15 = arith.constant 0.000000e+00 : f32
      %c0_16 = arith.constant 0 : index
      %55 = memref.load %arg3[%c0_16] : memref<2xf32, #tpu.memory_space<smem>>
      memref.store %cst_15, %arg3[%c0_16] : memref<2xf32, #tpu.memory_space<smem>>
      %cst_17 = arith.constant 0.000000e+00 : f32
      %c1_18 = arith.constant 1 : index
      %56 = memref.load %arg3[%c1_18] : memref<2xf32, #tpu.memory_space<smem>>
      memref.store %cst_17, %arg3[%c1_18] : memref<2xf32, #tpu.memory_space<smem>>
    } else {
    }
    %c0 = arith.constant 0 : index
    %c0_1 = arith.constant 0 : index
    %3 = vector.load %arg1[%c0, %c0_1] : memref<8x256xf32, #tpu.memory_space<vmem>>, vector<8x256xf32>
    %c0_2 = arith.constant 0 : index
    %c0_3 = arith.constant 0 : index
    %4 = vector.load %arg2[%c0_2, %c0_3] : memref<8x256xf32, #tpu.memory_space<vmem>>, vector<8x256xf32>
    %5 = arith.subf %3, %4 : vector<8x256xf32>
    %c240_i32 = arith.constant 240 : i32
    %6 = tpu.dynamic_rotate %5 by %c240_i32 dim 1 : vector<8x256xf32>, i32 -> vector<8x256xf32>
    %c255_i32 = arith.constant 255 : i32
    %7 = tpu.dynamic_rotate %5 by %c255_i32 dim 1 : vector<8x256xf32>, i32 -> vector<8x256xf32>
    %8 = tpu.iota {dimensions = array<i32: 1>} : vector<1x256xi32>
    %c240_i32_4 = arith.constant 240 : i32
    %9 = vector.broadcast %c240_i32_4 : i32 to vector<1x256xi32>
    %10 = arith.cmpi slt, %8, %9 : vector<1x256xi32>
    %c16_i32 = arith.constant 16 : i32
    %c0_i32_5 = arith.constant 0 : i32
    %11 = arith.cmpi eq, %c16_i32, %c0_i32_5 : i32
    %c1_i32 = arith.constant 1 : i32
    %12 = arith.select %11, %c1_i32, %c16_i32 : i32
    %13 = vector.broadcast %12 : i32 to vector<1x256xi32>
    %14 = arith.remsi %8, %13 : vector<1x256xi32>
    %c0_i32_6 = arith.constant 0 : i32
    %15 = vector.broadcast %c0_i32_6 : i32 to vector<1x256xi32>
    %16 = arith.cmpi ne, %14, %15 : vector<1x256xi32>
    %c0_i32_7 = arith.constant 0 : i32
    %17 = vector.broadcast %c0_i32_7 : i32 to vector<1x256xi32>
    %18 = arith.cmpi slt, %14, %17 : vector<1x256xi32>
    %c0_i32_8 = arith.constant 0 : i32
    %19 = arith.cmpi slt, %12, %c0_i32_8 : i32
    %20 = vector.broadcast %19 : i1 to vector<1x256xi1>
    %21 = vector.broadcast %20 : vector<1x256xi1> to vector<1x256xi1>
    %22 = arith.xori %18, %21 : vector<1x256xi1>
    %23 = arith.andi %22, %16 : vector<1x256xi1>
    %24 = vector.broadcast %12 : i32 to vector<1x256xi32>
    %25 = arith.addi %14, %24 : vector<1x256xi32>
    %26 = arith.select %23, %25, %14 : vector<1x256xi1>, vector<1x256xi32>
    %c15_i32 = arith.constant 15 : i32
    %27 = vector.broadcast %c15_i32 : i32 to vector<1x256xi32>
    %28 = arith.cmpi slt, %26, %27 : vector<1x256xi32>
    %29 = arith.subf %6, %5 : vector<8x256xf32>
    %30 = math.absf %29 : vector<8x256xf32>
    %cst = arith.constant 0.000000e+00 : f32
    %31 = vector.shape_cast %10 : vector<1x256xi1> to vector<1x256xi1>
    %32 = vector.broadcast %31 : vector<1x256xi1> to vector<8x256xi1>
    %33 = vector.broadcast %cst : f32 to vector<8x256xf32>
    %34 = arith.select %32, %30, %33 : vector<8x256xi1>, vector<8x256xf32>
    %35 = arith.subf %7, %5 : vector<8x256xf32>
    %36 = math.absf %35 : vector<8x256xf32>
    %cst_9 = arith.constant 0.000000e+00 : f32
    %37 = vector.shape_cast %28 : vector<1x256xi1> to vector<1x256xi1>
    %38 = vector.broadcast %37 : vector<1x256xi1> to vector<8x256xi1>
    %39 = vector.broadcast %cst_9 : f32 to vector<8x256xf32>
    %40 = arith.select %38, %36, %39 : vector<8x256xi1>, vector<8x256xf32>
    %c0_10 = arith.constant 0 : index
    %41 = memref.load %arg3[%c0_10] : memref<2xf32, #tpu.memory_space<smem>>
    %42 = vector.shape_cast %34 : vector<8x256xf32> to vector<1x8x256xf32>
    %cst_11 = arith.constant dense<0.000000e+00> : vector<1xf32>
    %43 = vector.multi_reduction <add>, %42, %cst_11 [1, 2] : vector<1x8x256xf32> to vector<1xf32>
    %44 = vector.shape_cast %43 : vector<1xf32> to vector<1x1x1xf32>
    %45 = vector.extract %44[0, 0, 0] : f32 from vector<1x1x1xf32>
    %46 = arith.addf %41, %45 : f32
    %c0_12 = arith.constant 0 : index
    %47 = memref.load %arg3[%c0_12] : memref<2xf32, #tpu.memory_space<smem>>
    memref.store %46, %arg3[%c0_12] : memref<2xf32, #tpu.memory_space<smem>>
    %c1 = arith.constant 1 : index
    %48 = memref.load %arg3[%c1] : memref<2xf32, #tpu.memory_space<smem>>
    %49 = vector.shape_cast %40 : vector<8x256xf32> to vector<1x8x256xf32>
    %cst_13 = arith.constant dense<0.000000e+00> : vector<1xf32>
    %50 = vector.multi_reduction <add>, %49, %cst_13 [1, 2] : vector<1x8x256xf32> to vector<1xf32>
    %51 = vector.shape_cast %50 : vector<1xf32> to vector<1x1x1xf32>
    %52 = vector.extract %51[0, 0, 0] : f32 from vector<1x1x1xf32>
    %53 = arith.addf %48, %52 : f32
    %c1_14 = arith.constant 1 : index
    %54 = memref.load %arg3[%c1_14] : memref<2xf32, #tpu.memory_space<smem>>
    memref.store %53, %arg3[%c1_14] : memref<2xf32, #tpu.memory_space<smem>>
    return
  }
  func.func @transform_0(%arg0: i32) -> (i32, i32) {
    %c0_i32 = arith.constant 0 : i32
    %c0_i32_0 = arith.constant 0 : i32
    return %arg0, %c0_i32 : i32, i32
  }
  func.func @transform_1(%arg0: i32) -> (i32, i32) {
    %c0_i32 = arith.constant 0 : i32
    %c0_i32_0 = arith.constant 0 : i32
    return %arg0, %c0_i32 : i32, i32
  }
  func.func @transform_2(%arg0: i32) -> i32 {
    %c0_i32 = arith.constant 0 : i32
    %c0_i32_0 = arith.constant 0 : i32
    return %c0_i32 : i32
  }
}

</mosaic_0001>

<bundles_post_ra>
// kernel: tpu_custom_call.1
= control target key start
LH: loop header
LB: loop body
LE: loop exit
PB: predicated region body
PF: predicated region fallthrough
CT: control target
= control target key end

     0   :  { %7 = vsyncpa [#allocation3], 0  ;;  %s270_s0 = inlined_call_operand.hbm [shape: f32[8,256], index: 0, kind: input, shape index: {}]   ;;  %s271_s1 = inlined_call_operand.hbm [shape: f32[8,256], index: 1, kind: input, shape index: {}]   ;;  %s272_s2 = inlined_call_operand.hbm [shape: f32[2], index: 2, kind: output, shape index: {}]  }
   0x1   :  { %8 = vsyncpa [#allocation6], 0 }
   0x2   :  { %9 = vsyncpa [#allocation4], 0  ;;  %s15_s11 = sshll.u32 %s270_s0, 4  ;;  %s241_s12 = smov [#allocation2]   ;;  %s16_s11 = int_to_ptr.hbm [resolvable:$true] %s15_s11 }
   0x3   :  { %s17_s13 = sshll.u32 %s241_s12, 4  ;;  %s26_s16 = sshll.u32 %s271_s1, 4  ;;  %s18_s13 = int_to_ptr.vmem [resolvable:$true] %s17_s13  ;;  %s27_s16 = int_to_ptr.hbm [resolvable:$true] %s26_s16 }
   0x4   :  { %20 = dma.hbm_to_vmem [thread:$0]  %s16_s11, 256, %s18_s13, [#allocation3]  }
   0x5   :  { %s242_s17 = smov [#allocation5]  }
   0x6   :  { %s28_s18 = sshll.u32 %s242_s17, 4  ;;  %s29_s18 = int_to_ptr.vmem [resolvable:$true] %s28_s18 }
   0x7   :  { %31 = dma.hbm_to_vmem [thread:$0]  %s27_s16, 256, %s29_s18, [#allocation6]  }
   0x8   :  { %235 = dma.done.wait [#allocation3], 256  }
   0x9   :  { %236 = vsyncadd [#allocation3], 4294967040 }
   0xa   :  { %237 = dma.done.wait [#allocation6], 256  }
   0xb   :  { %238 = vsyncadd [#allocation6], 4294967040  ;;  %v48_v0 = vld [vmem:[#allocation2] sm:$0xff]  ;;  %v50_v1 = vld [vmem:[#allocation5] sm:$0xff]  ;;  %s243_s0 = smov 127   ;;  %s244_s19 = smov 112   ;;  %v58_v6 = vlaneseq }
   0xc   :  { %v52_v2 = vsub.f32 %v48_v0, %v50_v1  ;;  %v49_v3 = vld [vmem:[#allocation2 + $0x8] sm:$0xff]  ;;  %v51_v4 = vld [vmem:[#allocation5 + $0x8] sm:$0xff]  ;;  %s152_s22 = sshll.u32 %s272_s2, 4  ;;  %s245_s24 = smov [#allocation7]   ;;  %s153_s22 = int_to_ptr.hbm [resolvable:$true] %s152_s22 }
   0xd   :  { %v53_v5 = vsub.f32 %v49_v3, %v51_v4  ;;  %v59_v9 = vand.u32 127, %v58_v6 }
   0xe   :  { %63 = vrot.lane.b32.xlu1 %v52_v2, %s243_s0  ;;  %54 = vrot.lane.b32.xlu0 %v52_v2, %s244_s19 }
   0xf   :  { %vm60_vm0 = vcmp.lt.s32.totalorder %v59_v9, 112  ;;  %vm67_vm1 = vcmp.lt.s32.totalorder %v59_v9, 127  ;;  %v70_v14 = vadd.s32 128, %v59_v9  ;;  %v77_v23 = vand.u32 15, %v59_v9 }
  0x11   :  { %vm72_vm2 = vcmp.lt.s32.totalorder %v70_v14, 240  ;;  %v84_v24 = vand.u32 15, %v70_v14  ;;  %vm97_vm3 = vcmp.lt.s32.totalorder %v77_v23, 15 }
  0x13   :  { %vm98_vm4 = vcmp.lt.s32.totalorder %v84_v24, 15 }
  0x16   :  { %65 = vrot.lane.b32.xlu1 %v53_v5, %s243_s0  ;;  %56 = vrot.lane.b32.xlu0 %v53_v5, %s244_s19 }
  0x80   :  { %v64_v7 = vpop.permute.xlu1 %63  ;;  %v55_v8 = vpop.permute.xlu0 %54 }
  0x88   :  { %v66_v10 = vpop.permute.xlu1 %65  ;;  %v57_v11 = vpop.permute.xlu0 %56 }
  0x89   :  { %v61_v12 = vsel %vm60_vm0, %v55_v8, %v57_v11  ;;  %v62_v13 = vsel %vm60_vm0, %v57_v11, %v55_v8  ;;  %v68_v15 = vsel %vm67_vm1, %v64_v7, %v66_v10  ;;  %v69_v16 = vsel %vm67_vm1, %v66_v10, %v64_v7 }
  0x8a   :  { %v100_v17 = vsub.f32 %v62_v13, %v53_v5  ;;  %v99_v18 = vsub.f32 %v61_v12, %v52_v2  ;;  %v109_v20 = vsub.f32 %v68_v15, %v52_v2  ;;  %v110_v21 = vsub.f32 %v69_v16, %v53_v5 }
  0x8c   :  { %v101_v19 = vand.u32 2147483647, %v99_v18  ;;  %v102_v22 = vand.u32 2147483647, %v100_v17  ;;  %v111_v27 = vand.u32 2147483647, %v109_v20 }
  0x8d   :  { %v112_v28 = vand.u32 2147483647, %v110_v21 }
  0x8e   :  { %v108_v25 = vsel %vm72_vm2, %v102_v22, 0.0  ;;  %v117_v29 = vsel %vm97_vm3, %v111_v27, 0.0 }
  0x8f   :  { %v120_v26 = vadd.f32 %v108_v25, %v101_v19  ;;  %v118_v30 = vsel %vm98_vm4, %v112_v28, 0.0 }
  0x90   :  { %v134_v31 = vadd.f32 %v118_v30, %v117_v29 }
  0x91   :  { %121 = vadd.xlane.f32.xlu2 %v120_v26 }
  0x99   :  { %135 = vadd.xlane.f32.xlu2 %v134_v31 }
 0x104   :  { %v122_v32 = vpop.xlane.xlu2 %121 }
 0x105   :  { %v123_v33 = vrot.slane %v122_v32, 4 }
 0x107   :  { %v124_v34 = vadd.f32 %v123_v33, %v122_v32 }
 0x109   :  { %v125_v35 = vrot.slane %v124_v34, 2 }
 0x10b   :  { %v126_v36 = vadd.f32 %v125_v35, %v124_v34 }
 0x10c   :  { %v136_v37 = vpop.xlane.xlu2 %135 }
 0x10d   :  { %v137_v38 = vrot.slane %v136_v37, 4  ;;  %v127_v39 = vrot.slane %v126_v36, 1 }
 0x10f   :  { %v138_v40 = vadd.f32 %v137_v38, %v136_v37  ;;  %v128_v41 = vadd.f32 %v127_v39, %v126_v36 }
 0x111   :  { %v139_v42 = vrot.slane %v138_v40, 2  ;;  %165 = vpush %v128_v41 }
 0x113   :  { %v140_v43 = vadd.f32 %v139_v42, %v138_v40 }
 0x115   :  { %v141_v44 = vrot.slane %v140_v43, 1 }
 0x117   :  { %v142_v45 = vadd.f32 %v141_v44, %v140_v43 }
 0x119   :  { %167 = vpush %v142_v45 }
 0x142   :  { %s166_s1 = spop %165 }
 0x143   :  { %132 = sst [smem:[#allocation7]] %s166_s1 }
 0x14a   :  { %s168_s23 = spop %167 }
 0x14b   :  { %146 = sst [smem:[#allocation7 + $0x1]] %s168_s23 }
 0x14c   :  { %155 = dma.smem_to_hbm %s245_s24, 16, %s153_s22, [#allocation4]  }
 0x14d   :  { %239 = dma.done.wait [#allocation4], 16  }
 0x14e   :  { %240 = vsyncadd [#allocation4], 4294967280 }
 0x14f   :  { %160 = sfence }
 0x150   :  { %161 = vsyncpa [#allocation3], 1 }
 0x151   :  { %162 = vsyncpa [#allocation6], 1 }
 0x152   :  { %163 = vsyncpa [#allocation4], 1 }

</bundles_post_ra>
